<compile_context>
chip_gen: v5e
topology: v5e:2x2
jax: 0.10.0
libtpu: 0.0.40
codegen_flags: <defaults>
</compile_context>

<pallas_src>
import jax
import jax.numpy as jnp
import numpy as np
from jax.experimental import pallas as pl
from jax.experimental.pallas import tpu as pltpu


def _subpixel_deconv_prelu_kernel(w_ref, p_ref, b_ref, a_ref, o_ref):
    # w_ref: (8*Cout, Kdim) bf16  phase-expanded (flipped) weight matrix
    # p_ref: (Kdim, tm)     bf16  patch tile; output voxels on the lane dim
    # b_ref, a_ref: (8*Cout, 1) f32  bias / PReLU slope per phase-channel
    # o_ref: (8*Cout, tm)   f32
    y = jnp.dot(w_ref[...], p_ref[...], preferred_element_type=jnp.float32)
    y = y + b_ref[...]
    o_ref[...] = jnp.where(y > 0.0, y, a_ref[...] * y)


def srblock3d_forward(x, weight, bias, alpha, *, stride=2, pad=2, tm=512,
                      compute_dtype=jnp.bfloat16):
    """ConvTranspose3d(stride=2, k, pad) + PReLU.

    x:      (N, Cin, D, H, W) float32
    weight: (Cin, Cout, K, K, K)   (PyTorch ConvTranspose3d layout)
    bias, alpha: (Cout,)
    returns (N, Cout, Do, Ho, Wo) float32 with Do = (D-1)*2 - 2*pad + K
    """
    N, Cin, D, H, W = x.shape
    _, Cout, K, _, _ = weight.shape
    assert stride == 2 and K % 2 == 0 and pad % 2 == 0 and K >= pad + 2, (
        "sub-pixel decomposition implemented for stride=2, even K, even pad")

    T = K // 2                       # taps per spatial dim per output parity
    pe = T - 1 - pad // 2            # per-phase stride-1 correlation padding
    Dq = D + 2 * pe - T + 1          # per-phase output extent (= Do // 2)
    Hq = H + 2 * pe - T + 1
    Wq = W + 2 * pe - T + 1
    Do, Ho, Wo = 2 * Dq, 2 * Hq, 2 * Wq
    Kdim = Cin * T ** 3
    Cout8 = 8 * Cout

    # ---- glue: phase-expanded weight matrix (8*Cout, Cin*T^3) -------------
    # wt[((rd*2+rh)*2+rw)*Cout + co, ci*T^3 + (jd*T+jh)*T + jw]
    #   = weight[ci, co, K-2-2*jd+rd, K-2-2*jh+rh, K-2-2*jw+rw]
    idx = np.array([[K - 2 - 2 * j + r for j in range(T)] for r in range(2)])
    w1 = weight[:, :, idx, :, :]            # (Cin, Cout, 2, T, K, K)
    w2 = w1[:, :, :, :, idx, :]             # (Cin, Cout, 2, T, 2, T, K)
    w3 = w2[..., idx]                       # (Cin, Cout, 2, T, 2, T, 2, T)
    wt = w3.transpose(2, 4, 6, 1, 0, 3, 5, 7).reshape(Cout8, Kdim)
    wt = wt.astype(compute_dtype)

    # ---- glue: per-phase im2col patch matrix (Kdim, M), voxels on minor ---
    # pt[ci*T^3 + j, ((n*Dq+qd)*Hq+qh)*Wq+qw] = x_pad[n, ci, qd+jd, qh+jh, qw+jw]
    xc = x.astype(compute_dtype)
    x_pad = jnp.pad(xc, ((0, 0), (0, 0), (pe, pe), (pe, pe), (pe, pe)))
    slabs = []
    for jd in range(T):
        for jh in range(T):
            for jw in range(T):
                slabs.append(x_pad[:, :, jd:jd + Dq, jh:jh + Hq, jw:jw + Wq])
    p = jnp.stack(slabs, axis=2)            # (N, Cin, T^3, Dq, Hq, Wq)
    M = N * Dq * Hq * Wq
    pt = p.transpose(1, 2, 0, 3, 4, 5).reshape(Kdim, M)

    tm = min(tm, pl.cdiv(M, 128) * 128)     # lane-dense tile, no oversizing
    m_pad = pl.cdiv(M, tm) * tm
    if m_pad != M:
        pt = jnp.pad(pt, ((0, 0), (0, m_pad - M)))

    bias8 = jnp.tile(bias.astype(jnp.float32), 8).reshape(Cout8, 1)
    alpha8 = jnp.tile(alpha.astype(jnp.float32), 8).reshape(Cout8, 1)

    out_t = pl.pallas_call(
        _subpixel_deconv_prelu_kernel,
        out_shape=jax.ShapeDtypeStruct((Cout8, m_pad), jnp.float32),
        grid_spec=pltpu.PrefetchScalarGridSpec(
            num_scalar_prefetch=0,
            grid=(m_pad // tm,),
            in_specs=[
                pl.BlockSpec((Cout8, Kdim), lambda i: (0, 0)),   # weight (resident)
                pl.BlockSpec((Kdim, tm), lambda i: (0, i)),      # patch tile
                pl.BlockSpec((Cout8, 1), lambda i: (0, 0)),      # bias
                pl.BlockSpec((Cout8, 1), lambda i: (0, 0)),      # PReLU slope
            ],
            out_specs=pl.BlockSpec((Cout8, tm), lambda i: (0, i)),
        ),
        compiler_params=pltpu.CompilerParams(
            dimension_semantics=("parallel",)),
    )(wt, pt, bias8, alpha8)

    # ---- glue: sub-pixel interleave back to NCDHW --------------------------
    out = out_t[:, :M].reshape(2, 2, 2, Cout, N, Dq, Hq, Wq)
    out = out.transpose(4, 3, 5, 0, 6, 1, 7, 2).reshape(N, Cout, Do, Ho, Wo)
    return out


def _reference(x, weight, bias, alpha, *, stride=2, pad=2):
    Cout, K = weight.shape[1], weight.shape[2]
    p_eff = K - 1 - pad
    rhs = weight[:, :, ::-1, ::-1, ::-1].transpose(1, 0, 2, 3, 4)  # (Cout,Cin,K,K,K)
    y = jax.lax.conv_general_dilated(
        x, rhs,
        window_strides=(1, 1, 1),
        padding=[(p_eff, p_eff)] * 3,
        lhs_dilation=(stride, stride, stride),
        dimension_numbers=("NCDHW", "OIDHW", "NCDHW"),
        precision=jax.lax.Precision.HIGHEST,
    )
    y = y + bias.reshape(1, Cout, 1, 1, 1)
    a = alpha.reshape(1, Cout, 1, 1, 1)
    return jnp.where(y > 0.0, y, a * y)


if __name__ == "__main__":
    key = jax.random.PRNGKey(0)
    N, Cin, Cout = 2, 3, 4
    D = H = W = 8
    K, STRIDE, PAD = 6, 2, 2

    kx, kw, kb = jax.random.split(key, 3)
    x = jax.random.normal(kx, (N, Cin, D, H, W), jnp.float32)

    # Deterministic synthetic parameters (shapes per nn.ConvTranspose3d / nn.PReLU).
    fan = Cin * K ** 3
    bound = 1.0 / np.sqrt(fan)
    weight = jax.random.uniform(kw, (Cin, Cout, K, K, K), jnp.float32, -bound, bound)
    bias = jax.random.uniform(kb, (Cout,), jnp.float32, -bound, bound)
    alpha = jnp.full((Cout,), 0.25, jnp.float32)  # PReLU default init

    out = jax.block_until_ready(
        srblock3d_forward(x, weight, bias, alpha, stride=STRIDE, pad=PAD))
    ref = jax.block_until_ready(
        _reference(x, weight, bias, alpha, stride=STRIDE, pad=PAD))

    assert out.shape == (N, Cout, 2 * D, 2 * H, 2 * W), out.shape
    # bf16 MXU operands vs. f32 HIGHEST reference -> relaxed tolerance.
    np.testing.assert_allclose(np.asarray(out), np.asarray(ref),
                               rtol=3e-2, atol=3e-2)
    print("KERNEL_OK")
</pallas_src>

<mosaic_0001>
module attributes {stable_mosaic.version = 11 : i64} {
  func.func @_subpixel_deconv_prelu_kernel(%arg0: i32, %arg1: memref<32x81xbf16, #tpu.memory_space<vmem>>, %arg2: memref<81x512xbf16, #tpu.memory_space<vmem>>, %arg3: memref<32x1xf32, #tpu.memory_space<vmem>>, %arg4: memref<32x1xf32, #tpu.memory_space<vmem>>, %arg5: memref<32x512xf32, #tpu.memory_space<vmem>>) attributes {dimension_semantics = [#tpu.dimension_semantics<parallel>], iteration_bounds = array<i64: 2>, scalar_prefetch = 0 : i64, scratch_operands = 0 : i64, tpu.core_type = #tpu.core_type<tc>, window_params = [{pipeline_mode = #tpu.pipeline_mode<synchronous>, transform_indices = @transform_0, window_bounds = array<i64: 32, 81>}, {transform_indices = @transform_1, window_bounds = array<i64: 81, 512>}, {pipeline_mode = #tpu.pipeline_mode<synchronous>, transform_indices = @transform_2, window_bounds = array<i64: 32, 1>}, {pipeline_mode = #tpu.pipeline_mode<synchronous>, transform_indices = @transform_3, window_bounds = array<i64: 32, 1>}, {transform_indices = @transform_4, window_bounds = array<i64: 32, 512>}]} {
    %c0 = arith.constant 0 : index
    %c0_0 = arith.constant 0 : index
    %0 = vector.load %arg1[%c0, %c0_0] : memref<32x81xbf16, #tpu.memory_space<vmem>>, vector<32x81xbf16>
    %c0_1 = arith.constant 0 : index
    %c0_2 = arith.constant 0 : index
    %1 = vector.load %arg2[%c0_1, %c0_2] : memref<81x512xbf16, #tpu.memory_space<vmem>>, vector<81x512xbf16>
    %cst = arith.constant dense<0.000000e+00> : vector<32x512xf32>
    %2 = tpu.matmul %0, %1, %cst {dimension_numbers = #tpu.dot_dimension_numbers<[1], [0], [0], [1], [0, 0, 1, 1], [], []>} : vector<32x81xbf16>, vector<81x512xbf16>, vector<32x512xf32> -> vector<32x512xf32>
    %c0_3 = arith.constant 0 : index
    %c0_4 = arith.constant 0 : index
    %3 = vector.load %arg3[%c0_3, %c0_4] : memref<32x1xf32, #tpu.memory_space<vmem>>, vector<32x1xf32>
    %4 = vector.broadcast %3 : vector<32x1xf32> to vector<32x512xf32>
    %5 = arith.addf %2, %4 : vector<32x512xf32>
    %cst_5 = arith.constant 0.000000e+00 : f32
    %6 = vector.broadcast %cst_5 : f32 to vector<32x512xf32>
    %7 = arith.cmpf ogt, %5, %6 : vector<32x512xf32>
    %c0_6 = arith.constant 0 : index
    %c0_7 = arith.constant 0 : index
    %8 = vector.load %arg4[%c0_6, %c0_7] : memref<32x1xf32, #tpu.memory_space<vmem>>, vector<32x1xf32>
    %9 = vector.broadcast %8 : vector<32x1xf32> to vector<32x512xf32>
    %10 = arith.mulf %9, %5 : vector<32x512xf32>
    %11 = arith.select %7, %5, %10 : vector<32x512xi1>, vector<32x512xf32>
    %c0_8 = arith.constant 0 : index
    %c0_9 = arith.constant 0 : index
    %12 = vector.load %arg5[%c0_8, %c0_9] : memref<32x512xf32, #tpu.memory_space<vmem>>, vector<32x512xf32>
    tpu.vector_store %arg5[%c0_8, %c0_9], %11 {strides = array<i32>} : memref<32x512xf32, #tpu.memory_space<vmem>>, vector<32x512xf32>,
    return
  }
  func.func @transform_0(%arg0: i32) -> (i32, i32) {
    %c0_i32 = arith.constant 0 : i32
    %c0_i32_0 = arith.constant 0 : i32
    %c0_i32_1 = arith.constant 0 : i32
    return %c0_i32, %c0_i32_0 : i32, i32
  }
  func.func @transform_1(%arg0: i32) -> (i32, i32) {
    %c0_i32 = arith.constant 0 : i32
    %c0_i32_0 = arith.constant 0 : i32
    return %c0_i32, %arg0 : i32, i32
  }
  func.func @transform_2(%arg0: i32) -> (i32, i32) {
    %c0_i32 = arith.constant 0 : i32
    %c0_i32_0 = arith.constant 0 : i32
    %c0_i32_1 = arith.constant 0 : i32
    return %c0_i32, %c0_i32_0 : i32, i32
  }
  func.func @transform_3(%arg0: i32) -> (i32, i32) {
    %c0_i32 = arith.constant 0 : i32
    %c0_i32_0 = arith.constant 0 : i32
    %c0_i32_1 = arith.constant 0 : i32
    return %c0_i32, %c0_i32_0 : i32, i32
  }
  func.func @transform_4(%arg0: i32) -> (i32, i32) {
    %c0_i32 = arith.constant 0 : i32
    %c0_i32_0 = arith.constant 0 : i32
    return %c0_i32, %arg0 : i32, i32
  }
}

</mosaic_0001>

<bundles_post_ra>
// kernel: tpu_custom_call.1
= control target key start
LH: loop header
LB: loop body
LE: loop exit
PB: predicated region body
PF: predicated region fallthrough
CT: control target
= control target key end

     0   :  { %9 = vsyncpa [#allocation3], 0  ;;  %s1199_s0 = inlined_call_operand.vmem [shape: bf16[32,81], index: 0, kind: input, shape index: {}]   ;;  %s1200_s1 = inlined_call_operand.hbm [shape: bf16[81,1024], index: 1, kind: input, shape index: {}]   ;;  %s1201_s2 = inlined_call_operand.vmem [shape: f32[32,1], index: 2, kind: input, shape index: {}]   ;;  %s1202_s3 = inlined_call_operand.vmem [shape: f32[32,1], index: 3, kind: input, shape index: {}]   ;;  %s1203_s4 = inlined_call_operand.hbm [shape: f32[32,1024], index: 4, kind: output, shape index: {}]  }
   0x1   :  { %11 = vsyncpa [#allocation3 + $0x1], 0 }
   0x2   :  { %12 = vsyncpa [#allocation4], 0 }
   0x3   :  { %14 = vsyncpa [#allocation4 + $0x1], 0  ;;  %s986_s15 = smov 0   ;;  %s988_s16 = smov 0  }
   0x4   :  { %s990_s17 = smov 0   ;;  %s992_s18 = smov 0  }
   0x5 LB: > { %s1007_s19 = sadd.s32 4294967295, %s952_s18   ;;  %s666_s20 = sadd.s32 4294967294, %s952_s18   ;;  %s952_s18 = sphi %s992_s18, %s1211_s18   ;;  %s948_s17 = sphi %s990_s17, %s1210_s17   ;;  %s944_s16 = sphi %s988_s16, %s1209_s16   ;;  %s940_s15 = sphi %s986_s15, %s1208_s15  }
   0x6   : > { %s1011_s21 = sadd.s32 1, %s952_s18   ;;  %s48_s22 = sadd.s32 1, %s948_s17 }
   0x7   : > { %s45_s23 = ssub.s32 %s952_s18, %s1011_s21  ;;  %p55_p0 = scmp.ne.s32.totalorder %s948_s17, %s944_s16 }
   0x8   : > { %p46_p1 = scmp.eq.s32.totalorder %s45_s23, 0  ;;  %p56_p2 = scmp.eq.s32.totalorder %s952_s18, 0 }
   0x9   : > { %p61_p3 = scmp.ne.s32.totalorder %s944_s16, %s940_s15  ;;  %p62_p4 = scmp.eq.s32.totalorder %s1007_s19, 0 }
   0xa   : > { %s1023_s24 = scalar_select %p46_p1, %s948_s17, %s48_s22  }
   0xb   : > { %p57_p5 = por %p56_p2, %p55_p0  ;;  %p1025_p6 = por %p62_p4, %p61_p3 }
   0xc   : > { %p127_p7 = scmp.eq.s32.totalorder %s1007_s19, 1  ;;  %p133_p8 = scmp.eq.s32.totalorder %s666_s20, 1 }
   0xd   : > { %p668_p9 = scmp.ge.s32.totalorder %s952_s18, 2  ;;  %p812_p10 = scmp.lt.s32.totalorder %s952_s18, 2 }
   0xe   : > { %p1032_p11 = por %p127_p7, %p55_p0  ;;  %p1036_p12 = por %p133_p8, %p61_p3 }
   0xf   : > { %s162_s28 = sand.u32 1, %s948_s17   ;;  %s774_s29 = sshll.u32 %s952_s18, 4 }
  0x10   : > { %s798_s30 = smul.u32 176, %s162_s28  ;;  %s171_s7 = scalar_lea.hbm %s1200_s1, %s774_s29 }
  0x11   : > { %p1045_p13 = pnand %p812_p10, %p57_p5  ;;  %s172_s9 = sshll.u32 %s171_s7, 4  ;;  %s173_s9 = int_to_ptr.hbm [resolvable:$true] %s172_s9 }
  0x12   : > { %s166_s10 = scalar_lea.vmem [#allocation2], %s798_s30  ;;  %p671_p0 = scmp.ge.s32.totalorder %s952_s18, 1 }
  0x13   : > { %s174_s11 = sshll.u32 %s166_s10, 4  ;;  %s163_s12 = scalar_lea.sflag [#allocation3], %s162_s28  ;;  %s175_s11 = int_to_ptr.vmem [resolvable:$true] %s174_s11 }
  0x14   : > { %s856_s13 = sshra.s32 %s173_s9, 4  ;;  %p860_p2 = pneg %p1045_p13  ;;  %s857_s13 = int_to_ptr.hbm [resolvable:$true] %s856_s13 }
  0x15   : > { %s858_s14 = scalar_lea.hbm %s857_s13, 176  ;;  %s863_s23 = scalar_lea.hbm %s1200_s1, 352 }
  0x16   : > { %p859_p1 = scmp.ne.s32.totalorder %s857_s13, %s858_s14  ;;  %p864_p5 = scmp.lt.s32.totalorder %s857_s13, %s1200_s1 }
  0x17   : > { %p865_p7 = scmp.lt.s32.totalorder %s863_s23, %s858_s14 }
  0x18   : > { %p861_p3 = pnand %p860_p2, %p859_p1 }
  0x19   : > { %p866_p8 = por %p865_p7, %p864_p5 }
  0x1a   : > { %p862_p4 = pneg %p861_p3 }
  0x1c   : > { %p867_p10 = pnand %p866_p8, %p862_p4 }
  0x1e   : > { %870 = shalt.err (!%p867_p10)
}
  0x1f   : > { %s954_s28 = smov 512   ;;  %s955_s30 = smov 256  }
  0x20   : > { %s956_s6 = smov 16   ;;  %p182_p1 = scmp.lt.s32.totalorder %s952_s18, 3 }
  0x21   : > { %807 = dma.hbm_to_vmem [thread:$0]  (!%p1045_p13), %s173_s9, 2816, %s175_s11, %s163_s12, %s954_s28, %s955_s30, %s956_s6  }
  0x22   : > { %p183_p2 = pnand %p671_p0, %p182_p1 }
  0x23   : > { %s1064_s7 = sand.u32 (!%p183_p2), 1, %s944_s16  }
  0x24   : > { %186 = sbr.rel (%p183_p2) target bundleno = 240 (0xf0), region = 36  ;;  %s189_s13 = scalar_lea.sflag (!%p183_p2), [#allocation3], %s1064_s7 }
  0x25   : > { %s799_s10 = smul.u32 (!%p183_p2), 176, %s1064_s7 }
  0x27   : > { %s1068_s14 = scalar_lea.vmem (!%p183_p2), [#allocation2], %s799_s10 }
  0x29   : > { %931 = dma.done.wait (%p1025_p6), %s189_s13, 2816  }
  0x2a   : > { %933 = vsyncadd (%p1025_p6), %s189_s13, 4294964480  ;;  %v957_v0 = vmov 0   ;;  %vm398_vm0 = vcmask 1040384   ;;  %v245_v1 = vld [vmem:[%s1068_s14 + $0xa0] sm:$0x11]  ;;  %vm391_vm1 = vcmask 662528  }
  0x2b   : > { %854 = vset.pattern.permute.xlu1 %v957_v0  ;;  %853 = vset.pattern.permute.xlu0 %v957_v0  ;;  %v246_v2 = vld [vmem:[%s1068_s14 + $0xa8] sm:$0x11]  ;;  %v343_v3 = vunpack.c.l.b16 %v245_v1  ;;  %v344_v4 = vunpack.c.h.b16 %v245_v1  ;;  %v400_v7 = vsel %vm398_vm0, 65535, %v957_v0  ;;  %v747_v12 = vld [vmem:[%s1068_s14 + $0x80] sm:$0xf]  ;;  %s672_s12 = sshll.u32 %s1064_s7, 7 }
  0x2c   : > { %855 = vset.pattern.permute.xlu2 %v957_v0  ;;  %v345_v5 = vunpack.c.l.b16 %v246_v2  ;;  %v346_v6 = vunpack.c.h.b16 %v246_v2  ;;  %v795_v13 = vld [vmem:[%s1068_s14 + $0x8c] sm:$0xf0]  ;;  %v793_v14 = vld [vmem:[%s1068_s14 + $0x84] sm:$0xf]  ;;  %v749_v15 = vld [vmem:[%s1068_s14 + $0x90] sm:$0xf0] }
  0x2d   : > { %v367_v8 = vpack.c.b16 %v343_v3, %v343_v3  ;;  %v368_v9 = vpack.c.b16 %v344_v4, %v344_v4  ;;  %v755_v16 = vld [vmem:[%s1068_s14 + $0x88] sm:$0xf]  ;;  %v796_v21 = vld [vmem:[%s1068_s14 + $0x94] sm:$0xf0]  ;;  %v794_v22 = vld [vmem:[%s1068_s14 + $0x8c] sm:$0xf]  ;;  %v748_v24 = vor.u32 %v795_v13, %v747_v12  ;;  %v752_v25 = vor.u32 %v793_v14, %v749_v15 }
  0x2e   : > { %v369_v10 = vpack.c.b16 %v345_v5, %v345_v5  ;;  %v370_v11 = vpack.c.b16 %v346_v6, %v346_v6  ;;  %v757_v23 = vld [vmem:[%s1068_s14 + $0x98] sm:$0xf0]  ;;  %v731_v26 = vld [vmem:[%s1068_s14 + $0x60] sm:$0xf]  ;;  %v791_v27 = vld [vmem:[%s1068_s14 + $0x6c] sm:$0xf0]  ;;  %v756_v28 = vor.u32 %v796_v21, %v755_v16 }
  0x2f   : > { %v402_v17 = vand.u32 %v400_v7, %v367_v8  ;;  %v405_v18 = vand.u32 %v400_v7, %v368_v9  ;;  %v760_v29 = vor.u32 %v794_v22, %v757_v23  ;;  %v789_v30 = vld [vmem:[%s1068_s14 + $0x64] sm:$0xf]  ;;  %v733_v31 = vld [vmem:[%s1068_s14 + $0x70] sm:$0xf0]  ;;  %v739_v32 = vld [vmem:[%s1068_s14 + $0x68] sm:$0xf]  ;;  %v732_v36 = vor.u32 %v791_v27, %v731_v26 }
  0x30   : > { %v408_v19 = vand.u32 %v400_v7, %v369_v10  ;;  %v411_v20 = vand.u32 %v400_v7, %v370_v11  ;;  %v792_v33 = vld [vmem:[%s1068_s14 + $0x74] sm:$0xf0]  ;;  %v790_v34 = vld [vmem:[%s1068_s14 + $0x6c] sm:$0xf]  ;;  %v741_v35 = vld [vmem:[%s1068_s14 + $0x78] sm:$0xf0]  ;;  %v736_v37 = vor.u32 %v789_v30, %v733_v31 }
  0x31   : > { %415 = vmatpush.bf16.msra.mxu0 %v402_v17  ;;  %434 = vmatpush.bf16.msra.mxu1 %v405_v18  ;;  %v715_v38 = vld [vmem:[%s1068_s14 + $0x40] sm:$0xf]  ;;  %v787_v39 = vld [vmem:[%s1068_s14 + $0x4c] sm:$0xf0]  ;;  %v740_v40 = vor.u32 %v792_v33, %v739_v32  ;;  %v744_v41 = vor.u32 %v790_v34, %v741_v35  ;;  %v785_v42 = vld [vmem:[%s1068_s14 + $0x44] sm:$0xf] }
  0x32   : > { %453 = vmatpush.bf16.msra.mxu2 %v408_v19  ;;  %472 = vmatpush.bf16.msra.mxu3 %v411_v20  ;;  %v717_v43 = vld [vmem:[%s1068_s14 + $0x50] sm:$0xf0]  ;;  %v723_v44 = vld [vmem:[%s1068_s14 + $0x48] sm:$0xf]  ;;  %v788_v45 = vld [vmem:[%s1068_s14 + $0x54] sm:$0xf0]  ;;  %v716_v50 = vor.u32 %v787_v39, %v715_v38 }
  0x33   : > { %v786_v46 = vld [vmem:[%s1068_s14 + $0x4c] sm:$0xf]  ;;  %v725_v47 = vld [vmem:[%s1068_s14 + $0x58] sm:$0xf0]  ;;  %v249_v48 = vld [vmem:[%s1201_s2 + $0x10] sm:$0xff]  ;;  %v720_v51 = vor.u32 %v785_v42, %v717_v43  ;;  %v724_v55 = vor.u32 %v788_v45, %v723_v44  ;;  %s1147_s20 = scalar_lea.vmem [#allocation5], %s672_s12 }
  0x34   : > { %v247_v49 = vld [vmem:[%s1201_s2] sm:$0xff]  ;;  %v728_v56 = vor.u32 %v786_v46, %v725_v47  ;;  %v707_v58 = vld [vmem:[%s1068_s14 + $0x28] sm:$0xf]  ;;  %v784_v60 = vld [vmem:[%s1068_s14 + $0x34] sm:$0xf0]  ;;  %263 = vperm.xlu1 %854, %v249_v48   ;;  %s797_s22 = sshll.u32 %s1007_s19, 5 }
  0x35   : > { %416 = vmatpush.bf16.msra.mxu0 %v748_v24  ;;  %435 = vmatpush.bf16.msra.mxu1 %v752_v25  ;;  %v699_v52 = vld [vmem:[%s1068_s14 + $0x20] sm:$0xf]  ;;  %v783_v53 = vld [vmem:[%s1068_s14 + $0x2c] sm:$0xf0]  ;;  %v781_v54 = vld [vmem:[%s1068_s14 + $0x24] sm:$0xf]  ;;  %v708_v3 = vor.u32 %v784_v60, %v707_v58  ;;  %s589_s5 = scalar_lea.hbm %s1203_s4, %s797_s22 }
  0x36   : > { %454 = vmatpush.bf16.msra.mxu2 %v756_v28  ;;  %473 = vmatpush.bf16.msra.mxu3 %v760_v29  ;;  %v701_v57 = vld [vmem:[%s1068_s14 + $0x30] sm:$0xf0]  ;;  %v782_v61 = vld [vmem:[%s1068_s14 + $0x2c] sm:$0xf]  ;;  %v709_v62 = vld [vmem:[%s1068_s14 + $0x38] sm:$0xf0]  ;;  %v700_v63 = vor.u32 %v783_v53, %v699_v52 }
  0x37   : > { %v505_v59 = vld [vmem:[%s1202_s3] sm:$0xff]  ;;  %253 = vperm.xlu0 %853, %v247_v49   ;;  %v704_v0 = vor.u32 %v781_v54, %v701_v57  ;;  %v712_v4 = vor.u32 %v782_v61, %v709_v62  ;;  %v691_v7 = vld [vmem:[%s1068_s14 + $0x8] sm:$0xf]  ;;  %v780_v8 = vld [vmem:[%s1068_s14 + $0x14] sm:$0xf0]  ;;  %s590_s19 = sshll.u32 %s1147_s20, 4  ;;  %s591_s19 = int_to_ptr.vmem [resolvable:$true] %s590_s19 }
  0x38   : > { %511 = vperm.xlu2 %855, %v505_v59   ;;  %v683_v1 = vld [vmem:[%s1068_s14] sm:$0xf]  ;;  %v779_v2 = vld [vmem:[%s1068_s14 + $0xc] sm:$0xf0]  ;;  %v777_v5 = vld [vmem:[%s1068_s14 + $0x4] sm:$0xf]  ;;  %v692_v16 = vor.u32 %v780_v8, %v691_v7 }
  0x39   : > { %417 = vmatpush.bf16.msra.mxu0 %v732_v36  ;;  %436 = vmatpush.bf16.msra.mxu1 %v736_v37  ;;  %v685_v6 = vld [vmem:[%s1068_s14 + $0x10] sm:$0xf0]  ;;  %v778_v9 = vld [vmem:[%s1068_s14 + $0xc] sm:$0xf]  ;;  %v693_v10 = vld [vmem:[%s1068_s14 + $0x18] sm:$0xf0]  ;;  %v684_v13 = vor.u32 %v779_v2, %v683_v1 }
  0x3a   : > { %455 = vmatpush.bf16.msra.mxu2 %v740_v40  ;;  %474 = vmatpush.bf16.msra.mxu3 %v744_v41  ;;  %v250_v11 = vld [vmem:[%s1201_s2 + $0x18] sm:$0xff]  ;;  %v248_v12 = vld [vmem:[%s1201_s2 + $0x8] sm:$0xff]  ;;  %v688_v14 = vor.u32 %v777_v5, %v685_v6  ;;  %v696_v17 = vor.u32 %v778_v9, %v693_v10  ;;  %v775_v18 = vld [vmem:[%s1199_s0] sm:$0xff]  ;;  %s592_s28 = sshll.u32 %s589_s5, 4  ;;  %s578_s30 = scalar_lea.sflag [#allocation4], %s1064_s7  ;;  %s593_s28 = int_to_ptr.hbm [resolvable:$true] %s592_s28 }
  0x3b   : > { %v506_v15 = vld [vmem:[%s1202_s3 + $0x8] sm:$0xff]  ;;  %v508_v19 = vld [vmem:[%s1202_s3 + $0x18] sm:$0xff]  ;;  %v507_v20 = vld [vmem:[%s1202_s3 + $0x10] sm:$0xff]  ;;  %s900_s6 = sshra.s32 %s593_s28, 4  ;;  %s906_s25 = scalar_lea.hbm %s1203_s4, 256  ;;  %s901_s6 = int_to_ptr.hbm [resolvable:$true] %s900_s6 }
  0x3c   : > { %268 = vperm.xlu1 %854, %v250_v11   ;;  %v776_v21 = vld [vmem:[%s1199_s0 + $0x8] sm:$0xff]  ;;  %s902_s10 = scalar_lea.hbm %s901_s6, 128  ;;  %p907_p3 = scmp.lt.s32.totalorder %s901_s6, %s1203_s4 }
  0x3d   : > { %418 = vmatpush.bf16.msra.mxu0 %v716_v50  ;;  %437 = vmatpush.bf16.msra.mxu1 %v720_v51  ;;  %p903_p6 = scmp.ne.s32.totalorder %s901_s6, %s902_s10  ;;  %p908_p4 = scmp.lt.s32.totalorder %s906_s25, %s902_s10 }
  0x3e   : > { %456 = vmatpush.bf16.msra.mxu2 %v724_v55  ;;  %475 = vmatpush.bf16.msra.mxu3 %v728_v56 }
  0x3f   : > { %258 = vperm.xlu0 %853, %v248_v12   ;;  %p904_p13 = pnand %p903_p6, %p1032_p11  ;;  %p909_p5 = por %p908_p4, %p907_p3 }
  0x40   : > { %516 = vperm.xlu2 %855, %v506_v15  }
  0x41   : > { %419 = vmatpush.bf16.msra.mxu0 %v700_v63  ;;  %438 = vmatpush.bf16.msra.mxu1 %v704_v0  ;;  %p905_p0 = pneg %p904_p13 }
  0x42   : > { %457 = vmatpush.bf16.msra.mxu2 %v708_v3  ;;  %476 = vmatpush.bf16.msra.mxu3 %v712_v4 }
  0x43   : > { %p910_p7 = pnand %p909_p5, %p905_p0 }
  0x44   : > { %526 = vperm.xlu1 %854, %v508_v19  }
  0x45   : > { %420 = vmatpush.bf16.msra.mxu0 %v684_v13  ;;  %439 = vmatpush.bf16.msra.mxu1 %v688_v14 }
  0x46   : > { %458 = vmatpush.bf16.msra.mxu2 %v692_v16  ;;  %477 = vmatpush.bf16.msra.mxu3 %v696_v17 }
  0x47   : > { %521 = vperm.xlu0 %853, %v507_v20  }
  0x48   : > { %761 = vmatmul.msk.bf16.vlgmr.msra.gmra.mxu0 %vm391_vm1, %v775_v18  ;;  %763 = vmatmul.msk.bf16.vlgmr.msra.gmra.mxu1 %vm391_vm1, %v775_v18 }
  0x49   : > { %765 = vmatmul.msk.bf16.vlgmr.msra.gmra.mxu2 %vm391_vm1, %v775_v18  ;;  %767 = vmatmul.msk.bf16.vlgmr.msra.gmra.mxu3 %vm391_vm1, %v775_v18 }
  0x58   : > { %762 = vmatmul.msk.bf16.gmra.mxu0 %vm391_vm1, %v776_v21  ;;  %764 = vmatmul.msk.bf16.gmra.mxu1 %vm391_vm1, %v776_v21 }
  0x59   : > { %766 = vmatmul.msk.bf16.gmra.mxu2 %vm391_vm1, %v776_v21  ;;  %768 = vmatmul.msk.bf16.gmra.mxu3 %vm391_vm1, %v776_v21 }
  0x92   : > { %v512_v23 = vpop.permute.xlu2 %511 }
  0x9a   : > { %v517_v34 = vpop.permute.xlu2 %516 }
  0xa6   : > { %v264_v30 = vpop.permute.xlu1 %263 }
  0xa9   : > { %v254_v22 = vpop.permute.xlu0 %253 }
  0xae   : > { %v269_v51 = vpop.permute.xlu1 %268 }
  0xb1   : > { %v259_v33 = vpop.permute.xlu0 %258 }
  0xb6   : > { %v527_v13 = vpop.permute.xlu1 %526 }
  0xb9   : > { %v522_v62 = vpop.permute.xlu0 %521 }
  0xc5   : > { %v422_v24 = vpop.f32.mrf.mxu0  ;;  %v441_v25 = vpop.f32.mrf.mxu1 }
  0xc6   : > { %v423_v26 = vadd.f32 %v422_v24, %v254_v22  ;;  %v442_v27 = vadd.f32 %v441_v25, %v254_v22 }
  0xc8   : > { %vm489_vm2 = vcmp.gt.f32.partialorder %v423_v26, 0.0  ;;  %vm490_vm3 = vcmp.gt.f32.partialorder %v442_v27, 0.0  ;;  %v529_v28 = vmul.f32 %v512_v23, %v423_v26  ;;  %v530_v29 = vmul.f32 %v512_v23, %v442_v27 }
  0xca   : > { %v545_v31 = vsel %vm489_vm2, %v423_v26, %v529_v28  ;;  %v546_v32 = vsel %vm490_vm3, %v442_v27, %v530_v29 }
  0xcb   : > { %561 = vst [vmem:[%s1147_s20] sm:$0xff] %v545_v31 }
  0xcc   : > { %562 = vst [vmem:[%s1147_s20 + $0x8] sm:$0xff] %v546_v32  ;;  %v460_v35 = vpop.f32.mrf.mxu2  ;;  %v479_v36 = vpop.f32.mrf.mxu3 }
  0xcd   : > { %v461_v37 = vadd.f32 %v460_v35, %v254_v22  ;;  %v480_v38 = vadd.f32 %v479_v36, %v254_v22  ;;  %v424_v39 = vpop.f32.mrf.mxu0  ;;  %v443_v40 = vpop.f32.mrf.mxu1 }
  0xce   : > { %v425_v41 = vadd.f32 %v424_v39, %v259_v33  ;;  %v444_v42 = vadd.f32 %v443_v40, %v259_v33 }
  0xcf   : > { %vm491_vm4 = vcmp.gt.f32.partialorder %v461_v37, 0.0  ;;  %v531_v43 = vmul.f32 %v512_v23, %v461_v37  ;;  %vm492_vm5 = vcmp.gt.f32.partialorder %v480_v38, 0.0  ;;  %v532_v44 = vmul.f32 %v512_v23, %v480_v38 }
  0xd0   : > { %vm493_vm6 = vcmp.gt.f32.partialorder %v425_v41, 0.0  ;;  %vm494_vm7 = vcmp.gt.f32.partialorder %v444_v42, 0.0  ;;  %v533_v45 = vmul.f32 %v517_v34, %v425_v41  ;;  %v534_v46 = vmul.f32 %v517_v34, %v444_v42 }
  0xd1   : > { %v547_v47 = vsel %vm491_vm4, %v461_v37, %v531_v43  ;;  %v548_v48 = vsel %vm492_vm5, %v480_v38, %v532_v44 }
  0xd2   : > { %563 = vst [vmem:[%s1147_s20 + $0x10] sm:$0xff] %v547_v47  ;;  %v549_v49 = vsel %vm493_vm6, %v425_v41, %v533_v45  ;;  %v550_v50 = vsel %vm494_vm7, %v444_v42, %v534_v46 }
  0xd3   : > { %564 = vst [vmem:[%s1147_s20 + $0x18] sm:$0xff] %v548_v48 }
  0xd4   : > { %565 = vst [vmem:[%s1147_s20 + $0x20] sm:$0xff] %v549_v49  ;;  %v462_v52 = vpop.f32.mrf.mxu2  ;;  %v481_v53 = vpop.f32.mrf.mxu3 }
  0xd5   : > { %566 = vst [vmem:[%s1147_s20 + $0x28] sm:$0xff] %v550_v50  ;;  %v463_v54 = vadd.f32 %v462_v52, %v259_v33  ;;  %v482_v55 = vadd.f32 %v481_v53, %v259_v33  ;;  %v427_v56 = vpop.f32.mrf.mxu0  ;;  %v446_v57 = vpop.f32.mrf.mxu1 }
  0xd6   : > { %v428_v58 = vadd.f32 %v427_v56, %v264_v30  ;;  %v447_v59 = vadd.f32 %v446_v57, %v264_v30 }
  0xd7   : > { %vm495_vm8 = vcmp.gt.f32.partialorder %v463_v54, 0.0  ;;  %v535_v60 = vmul.f32 %v517_v34, %v463_v54  ;;  %vm496_vm9 = vcmp.gt.f32.partialorder %v482_v55, 0.0  ;;  %v536_v61 = vmul.f32 %v517_v34, %v482_v55 }
  0xd8   : > { %vm497_vm10 = vcmp.gt.f32.partialorder %v428_v58, 0.0  ;;  %v537_v63 = vmul.f32 %v522_v62, %v428_v58  ;;  %vm498_vm11 = vcmp.gt.f32.partialorder %v447_v59, 0.0  ;;  %v538_v0 = vmul.f32 %v522_v62, %v447_v59 }
  0xd9   : > { %v551_v1 = vsel %vm495_vm8, %v463_v54, %v535_v60  ;;  %v552_v2 = vsel %vm496_vm9, %v482_v55, %v536_v61 }
  0xda   : > { %567 = vst [vmem:[%s1147_s20 + $0x30] sm:$0xff] %v551_v1  ;;  %v553_v3 = vsel %vm497_vm10, %v428_v58, %v537_v63  ;;  %v554_v4 = vsel %vm498_vm11, %v447_v59, %v538_v0 }
  0xdb   : > { %568 = vst [vmem:[%s1147_s20 + $0x38] sm:$0xff] %v552_v2 }
  0xdc   : > { %569 = vst [vmem:[%s1147_s20 + $0x40] sm:$0xff] %v553_v3  ;;  %v465_v5 = vpop.f32.mrf.mxu2  ;;  %v484_v6 = vpop.f32.mrf.mxu3 }
  0xdd   : > { %570 = vst [vmem:[%s1147_s20 + $0x48] sm:$0xff] %v554_v4  ;;  %v466_v7 = vadd.f32 %v465_v5, %v264_v30  ;;  %v485_v8 = vadd.f32 %v484_v6, %v264_v30  ;;  %v429_v9 = vpop.f32.mrf.mxu0  ;;  %v448_v10 = vpop.f32.mrf.mxu1 }
  0xde   : > { %v430_v11 = vadd.f32 %v429_v9, %v269_v51  ;;  %v449_v12 = vadd.f32 %v448_v10, %v269_v51 }
  0xdf   : > { %vm499_vm12 = vcmp.gt.f32.partialorder %v466_v7, 0.0  ;;  %v539_v14 = vmul.f32 %v522_v62, %v466_v7  ;;  %vm500_vm13 = vcmp.gt.f32.partialorder %v485_v8, 0.0  ;;  %v540_v15 = vmul.f32 %v522_v62, %v485_v8 }
  0xe0   : > { %vm501_vm14 = vcmp.gt.f32.partialorder %v430_v11, 0.0  ;;  %v541_v16 = vmul.f32 %v527_v13, %v430_v11  ;;  %vm502_vm15 = vcmp.gt.f32.partialorder %v449_v12, 0.0  ;;  %v542_v17 = vmul.f32 %v527_v13, %v449_v12 }
  0xe1   : > { %v555_v18 = vsel %vm499_vm12, %v466_v7, %v539_v14  ;;  %v556_v19 = vsel %vm500_vm13, %v485_v8, %v540_v15 }
  0xe2   : > { %571 = vst [vmem:[%s1147_s20 + $0x50] sm:$0xff] %v555_v18  ;;  %v557_v20 = vsel %vm501_vm14, %v430_v11, %v541_v16  ;;  %v558_v21 = vsel %vm502_vm15, %v449_v12, %v542_v17 }
  0xe3   : > { %572 = vst [vmem:[%s1147_s20 + $0x58] sm:$0xff] %v556_v19 }
  0xe4   : > { %573 = vst [vmem:[%s1147_s20 + $0x60] sm:$0xff] %v557_v20  ;;  %v467_v22 = vpop.f32.mrf.mxu2  ;;  %v486_v23 = vpop.f32.mrf.mxu3 }
  0xe5   : > { %574 = vst [vmem:[%s1147_s20 + $0x68] sm:$0xff] %v558_v21  ;;  %v468_v24 = vadd.f32 %v467_v22, %v269_v51  ;;  %v487_v25 = vadd.f32 %v486_v23, %v269_v51 }
  0xe7   : > { %vm503_vm0 = vcmp.gt.f32.partialorder %v468_v24, 0.0  ;;  %v543_v26 = vmul.f32 %v527_v13, %v468_v24  ;;  %vm504_vm1 = vcmp.gt.f32.partialorder %v487_v25, 0.0  ;;  %v544_v27 = vmul.f32 %v527_v13, %v487_v25 }
  0xe9   : > { %v559_v28 = vsel %vm503_vm0, %v468_v24, %v543_v26  ;;  %v560_v29 = vsel %vm504_vm1, %v487_v25, %v544_v27 }
  0xea   : > { %575 = vst [vmem:[%s1147_s20 + $0x70] sm:$0xff] %v559_v28 }
  0xeb   : > { %576 = vst [vmem:[%s1147_s20 + $0x78] sm:$0xff] %v560_v29 }
  0xec   : > { %913 = shalt.err (!%p910_p7)
}
  0xed   : > { %s958_s7 = smov 512   ;;  %s959_s11 = smov 1024  }
  0xee   : > { %s960_s12 = smov 32  }
  0xef   : > { %802 = dma.vmem_to_hbm [thread:$0]  (%p1032_p11), %s591_s19, 2048, %s593_s28, %s578_s30, %s958_s7, %s959_s11, %s960_s12  }
  0xf0 PF: > { %s607_s20 = sand.u32 1, %s940_s15   ;;  %p809_p8 = pnand %p668_p9, %p1036_p12 }
  0xf1   : > { %s608_s22 = scalar_lea.sflag [#allocation4], %s607_s20 }
  0xf2   : > { %p810_p10 = pneg %p809_p8 }
  0xf4   : > { %935 = dma.done.wait (%p810_p10), %s608_s22, 2048  }
  0xf5   : > { %937 = vsyncadd (%p810_p10), %s608_s22, 4294965248  ;;  %p17_p1 = scmp.ge.s32.totalorder %s1011_s21, 4   ;;  %s1208_s15 = smov %s944_s16 }
  0xf6   : > { %s1209_s16 = smov %s948_s17  ;;  %s1210_s17 = smov %s1023_s24 }
  0xf7   : > { %s1211_s18 = smov %s1011_s21  ;;  %19 = sbr.rel (!%p17_p1) target bundleno = 5 (0x5), region = 81 }
  0xfc   :  { %614 = vsyncpa [#allocation3], 1 }
  0xfd   :  { %616 = vsyncpa [#allocation3 + $0x1], 1 }
  0xfe   :  { %617 = vsyncpa [#allocation4], 1 }
  0xff   :  { %619 = vsyncpa [#allocation4 + $0x1], 1 }

</bundles_post_ra>
